<compile_context>
chip_gen: v7x
topology: tpu7x:2x2x1
jax: 0.10.0
libtpu: 0.0.40
codegen_flags: <defaults>
</compile_context>

<pallas_src>
import math
from functools import partial

import jax
import jax.numpy as jnp
from jax import lax
from jax.experimental import pallas as pl
from jax.experimental.pallas import tpu as pltpu

MASK_VALUE = -1e9


# ------------------------- device-dependent knobs ---------------------------

_VMEM_LIMIT_CACHE = None


def _vmem_limit_bytes():
    """Generation-aware VMEM limit: headroom on 64 MiB parts (v7x-class),
    bigger budget on 128 MiB parts (v5e/v6e)."""
    global _VMEM_LIMIT_CACHE
    if _VMEM_LIMIT_CACHE is None:
        cap = 64 * 1024 * 1024
        try:
            cap = int(getattr(pltpu.get_tpu_info(), "vmem_capacity_bytes", cap))
        except Exception:
            pass
        _VMEM_LIMIT_CACHE = (100 * 1024 * 1024 if cap >= 128 * 1024 * 1024
                             else 52 * 1024 * 1024)
    return _VMEM_LIMIT_CACHE


def _pick_row_tile(R, row_tile=512):
    """Large row tiles amortize per-step overhead; keep >=2 row tiles when the
    problem is big enough so megacore / dual-TC generations shard the grid."""
    if R <= 256:
        return R
    if R <= row_tile:
        half = -(-R // 2)
        return max(256, ((half + 7) // 8) * 8)
    return row_tile


def _const_spec(shape):
    """Constant-index (resident weight/bias) operand: single-buffered, since the
    block never changes across the grid (double-buffering it is pure VMEM waste)."""
    n = len(shape)
    return pl.BlockSpec(shape, lambda *_: (0,) * n, pipeline_mode=pl.Buffered(1))


# ----------------------------- in-kernel math -------------------------------

def _gelu(x):
    # matches the PyTorch gelu() in the module
    return 0.5 * x * (1.0 + jnp.tanh(math.sqrt(2.0 / math.pi) * (x + 0.044715 * x ** 3)))


def _layernorm(x, g, b, eps=1e-5):
    u = jnp.mean(x, axis=-1, keepdims=True)
    d = x - u
    s = jnp.mean(d * d, axis=-1, keepdims=True)
    return g * (d * lax.rsqrt(s + eps)) + b


# --------------------------- kernel A: QKV proj -----------------------------

def qkv_kernel(x_ref, w_ref, b_ref, qkv_ref):
    # x: (TM, H) bf16 rows; w: (H, 3H) bf16 resident; single lane-dense output.
    # 1/sqrt(dh) is already folded into the Q columns of w/b.
    qkv = jnp.dot(x_ref[...], w_ref[...],
                  preferred_element_type=jnp.float32) + b_ref[...]
    qkv_ref[...] = qkv.astype(jnp.bfloat16)


# ------------------------ kernel B: attention core --------------------------

def attn_core_kernel(n_head, H, qkv_ref, cb_ref, pb_ref, o_ref):
    # qkv: (S, 3H) bf16 rows of one batch (q/k/v in static lane slices, heads packed).
    # cb:  (S, S) f32 additive causal bias (resident across the grid).
    # pb:  (1, S) f32 additive key-padding bias for this batch.
    # o:   (S, H) bf16 merged-head output, written lane-dense into the (R, H) stream.
    S = qkv_ref.shape[0]
    dh = H // n_head
    bias = cb_ref[...] + pb_ref[...]                       # (S, S); hoisted over heads
    for h in range(n_head):
        lo = h * dh
        q = qkv_ref[:, lo:lo + dh]                         # pre-scaled by 1/sqrt(dh)
        k = qkv_ref[:, H + lo:H + lo + dh]
        v = qkv_ref[:, 2 * H + lo:2 * H + lo + dh]
        s = lax.dot_general(q, k, (((1,), (1,)), ((), ())),
                            preferred_element_type=jnp.float32) + bias
        s = s - jnp.max(s, axis=-1, keepdims=True)
        p = jnp.exp(s)
        p = p * pl.reciprocal(jnp.sum(p, axis=-1, keepdims=True), approx=True)
        o = jnp.dot(p.astype(jnp.bfloat16), v, preferred_element_type=jnp.float32)
        o_ref[:, lo:lo + dh] = o.astype(o_ref.dtype)
    # TODO(synk): for S >~ 1-2k stream K/V flash-style (online softmax over KV tiles)
    # instead of materializing the full (S, S) score tile per head.


# -------------- kernel C: out-proj + LN1 + MLP + LN2 (row tiled) -------------

def post_attn_kernel(x_ref, a_ref,
                     wp_ref, bp_ref, g1_ref, b1_ref,
                     wfc_ref, bfc_ref, wm_ref, bm_ref, g2_ref, b2_ref,
                     o_ref):
    # c_proj(attention output) + residual + ln_1
    a = jnp.dot(a_ref[...], wp_ref[...],
                preferred_element_type=jnp.float32) + bp_ref[...]
    n = _layernorm(x_ref[...].astype(jnp.float32) + a, g1_ref[...], b1_ref[...])

    # MLP: gelu(n @ w_fc + b_fc) @ w_mproj + b_mproj   (elementwise math kept in f32)
    hfc = jnp.dot(n.astype(jnp.bfloat16), wfc_ref[...],
                  preferred_element_type=jnp.float32) + bfc_ref[...]
    hfc = _gelu(hfc)
    m = jnp.dot(hfc.astype(jnp.bfloat16), wm_ref[...],
                preferred_element_type=jnp.float32) + bm_ref[...]

    o_ref[...] = _layernorm(n + m, g2_ref[...], b2_ref[...]).astype(o_ref.dtype)
    # TODO(synk): for H >= ~1.5k the resident MLP weights (18*H^2 bytes bf16) exceed
    # v7x's 64 MiB VMEM; add a reduction grid axis over the 4H dim (acc scratch +
    # pl.when init/finalize) or split this into an FC kernel and a proj+LN kernel.


# ------------------------------ Pallas wrapper -------------------------------

def transformer_block(h, causal_bias, pad_bias, kp, n_head,
                      out_dtype=jnp.bfloat16, row_tile=512):
    """One transformer Block = 3 pallas_calls (QKV proj / attention core / rest)."""
    B, S, H = h.shape
    R = B * S
    tm = _pick_row_tile(R, row_tile)
    n_row_tiles = pl.cdiv(R, tm)

    cparams = pltpu.CompilerParams(dimension_semantics=("parallel",),
                                   vmem_limit_bytes=_vmem_limit_bytes())

    x2 = h.reshape(R, H)

    # --- A: fused Q/K/V projection, row tiled, resident bf16 (H, 3H) weight ---
    qkv2 = pl.pallas_call(
        qkv_kernel,
        out_shape=jax.ShapeDtypeStruct((R, 3 * H), jnp.bfloat16),
        grid=(n_row_tiles,),
        in_specs=[pl.BlockSpec((tm, H), lambda i: (i, 0)),
                  _const_spec((H, 3 * H)), _const_spec((1, 3 * H))],
        out_specs=pl.BlockSpec((tm, 3 * H), lambda i: (i, 0)),
        compiler_params=cparams,
    )(x2, kp['w_qkv'], kp['b_qkv'])

    # --- B: attention core, one grid step per batch, all heads packed.
    # Reads the flat (S, 3H) qkv rows of that batch directly (no HBM head
    # split/merge transposes) and writes the merged-head (S, H) block lane-dense
    # straight into the (R, H) layout kernel C consumes. ---
    a2 = pl.pallas_call(
        partial(attn_core_kernel, n_head, H),
        out_shape=jax.ShapeDtypeStruct((R, H), jnp.bfloat16),
        grid=(B,),
        in_specs=[pl.BlockSpec((S, 3 * H), lambda b: (b, 0)),
                  _const_spec((S, S)),
                  pl.BlockSpec((None, 1, S), lambda b: (b, 0, 0))],
        out_specs=pl.BlockSpec((S, H), lambda b: (b, 0)),
        compiler_params=cparams,
    )(qkv2, causal_bias, pad_bias)

    # --- C: out-proj + residual + LN1 + MLP + residual + LN2, row tiled ---
    out2 = pl.pallas_call(
        post_attn_kernel,
        out_shape=jax.ShapeDtypeStruct((R, H), out_dtype),
        grid=(n_row_tiles,),
        in_specs=[pl.BlockSpec((tm, H), lambda i: (i, 0)),   # residual stream (bf16)
                  pl.BlockSpec((tm, H), lambda i: (i, 0)),   # attention output (bf16)
                  _const_spec((H, H)), _const_spec((1, H)),
                  _const_spec((1, H)), _const_spec((1, H)),
                  _const_spec((H, 4 * H)), _const_spec((1, 4 * H)),
                  _const_spec((4 * H, H)), _const_spec((1, H)),
                  _const_spec((1, H)), _const_spec((1, H))],
        out_specs=pl.BlockSpec((tm, H), lambda i: (i, 0)),
        compiler_params=cparams,
    )(x2, a2, kp['w_aproj'], kp['b_aproj'], kp['g1'], kp['b1'],
      kp['w_fc'], kp['b_fc'], kp['w_mproj'], kp['b_mproj'], kp['g2'], kp['b2'])

    return out2.reshape(B, S, H)


def prepare_block_params(bp, n_head):
    """Fold 1/sqrt(dh) into the Q columns of the fused QKV weight, cast matmul
    weights to bf16, biases/gains -> (1, ·) f32."""
    H = bp['w_aproj'].shape[0]
    scale = 1.0 / math.sqrt(H // n_head)
    col_scale = jnp.concatenate([jnp.full((H,), scale, jnp.float32),
                                 jnp.ones((2 * H,), jnp.float32)])
    return dict(
        w_qkv=(bp['w_attn'] * col_scale[None, :]).astype(jnp.bfloat16),
        b_qkv=(bp['b_attn'] * col_scale).reshape(1, 3 * H).astype(jnp.float32),
        w_aproj=bp['w_aproj'].astype(jnp.bfloat16),
        b_aproj=bp['b_aproj'].reshape(1, H),
        g1=bp['g1'].reshape(1, H), b1=bp['b1'].reshape(1, H),
        w_fc=bp['w_fc'].astype(jnp.bfloat16),
        b_fc=bp['b_fc'].reshape(1, -1),
        w_mproj=bp['w_mproj'].astype(jnp.bfloat16),
        b_mproj=bp['b_mproj'].reshape(1, H),
        g2=bp['g2'].reshape(1, H), b2=bp['b2'].reshape(1, H),
    )


def transformer_forward(params, x_idx, sequence_mask, n_head):
    # Embedding gather + sum over the per-token "input" axis: plain-JAX glue
    # (dynamic embedding gather has no clean single-kernel Pallas equivalent).
    # Dropout layers (edpt/adpt/rdpt) are identity in eval mode.
    e = jnp.take(params['embed'], x_idx, axis=0)     # (B, S, I, H)
    h = e.sum(axis=2)                                # (B, S, H) f32
    B, S, H = h.shape

    # Pre-folded additive attention biases shared by every layer: kernel B then
    # does a single add per score tile (no iota/compare/select in-kernel).
    causal_bias = jnp.where(
        lax.broadcasted_iota(jnp.int32, (S, S), 1) <=
        lax.broadcasted_iota(jnp.int32, (S, S), 0),
        0.0, MASK_VALUE).astype(jnp.float32)                         # (S, S)
    pad_bias = jnp.where(sequence_mask > 0.5, 0.0, MASK_VALUE
                         ).astype(jnp.float32).reshape(B, 1, S)      # (B, 1, S)

    h = h.astype(jnp.bfloat16)                       # bf16 inter-layer stream
    blocks = params['blocks']
    for li, bp in enumerate(blocks):
        out_dtype = jnp.float32 if li == len(blocks) - 1 else jnp.bfloat16
        h = transformer_block(h, causal_bias, pad_bias,
                              prepare_block_params(bp, n_head), n_head,
                              out_dtype=out_dtype)
    return h


# --------------------------- parameter construction --------------------------

def init_params(key, vocab, H, nL):
    keys = jax.random.split(key, 1 + nL)
    params = {'embed': 0.02 * jax.random.normal(keys[0], (vocab, H), jnp.float32)}
    blocks = []
    for l in range(nL):
        k = jax.random.split(keys[1 + l], 4)
        blocks.append(dict(
            w_attn=0.02 * jax.random.normal(k[0], (H, 3 * H), jnp.float32),
            b_attn=jnp.zeros((3 * H,), jnp.float32),
            w_aproj=0.02 * jax.random.normal(k[1], (H, H), jnp.float32),
            b_aproj=jnp.zeros((H,), jnp.float32),
            g1=jnp.ones((H,), jnp.float32), b1=jnp.zeros((H,), jnp.float32),
            w_fc=0.02 * jax.random.normal(k[2], (H, 4 * H), jnp.float32),
            b_fc=jnp.zeros((4 * H,), jnp.float32),
            w_mproj=0.02 * jax.random.normal(k[3], (4 * H, H), jnp.float32),
            b_mproj=jnp.zeros((H,), jnp.float32),
            g2=jnp.ones((H,), jnp.float32), b2=jnp.zeros((H,), jnp.float32),
        ))
    params['blocks'] = blocks
    return params


# ------------------------------ pure-JAX reference ---------------------------

def reference_forward(params, x_idx, mask, n_head):
    hp = lax.Precision.HIGHEST
    e = jnp.take(params['embed'], x_idx, axis=0)
    h = e.sum(axis=2)
    B, S, H = h.shape
    dh = H // n_head
    causal = jnp.tril(jnp.ones((S, S), jnp.float32))
    for p in params['blocks']:
        x = h
        qkv = jnp.dot(x.reshape(B * S, H), p['w_attn'], precision=hp) + p['b_attn']
        q = qkv[:, 0 * H:1 * H].reshape(B, S, n_head, dh).transpose(0, 2, 1, 3)
        k = qkv[:, 1 * H:2 * H].reshape(B, S, n_head, dh).transpose(0, 2, 1, 3)
        v = qkv[:, 2 * H:3 * H].reshape(B, S, n_head, dh).transpose(0, 2, 1, 3)
        w = jnp.einsum('bhqd,bhkd->bhqk', q, k, precision=hp) / math.sqrt(dh)
        bmask = (causal[None, None, :, :] * mask[:, None, None, :])
        w = w * bmask + (-1e9) * (1.0 - bmask)
        w = jax.nn.softmax(w, axis=-1)
        a = jnp.einsum('bhqk,bhkd->bhqd', w, v, precision=hp)
        a = a.transpose(0, 2, 1, 3).reshape(B, S, H)
        a = (jnp.dot(a.reshape(B * S, H), p['w_aproj'], precision=hp)
             + p['b_aproj']).reshape(B, S, H)
        n = _layernorm(x + a, p['g1'], p['b1'])
        hfc = _gelu(jnp.dot(n.reshape(B * S, H), p['w_fc'], precision=hp) + p['b_fc'])
        m = (jnp.dot(hfc, p['w_mproj'], precision=hp) + p['b_mproj']).reshape(B, S, H)
        h = _layernorm(n + m, p['g2'], p['b2'])
    return h


# ----------------------------------- main ------------------------------------

if __name__ == "__main__":
    B, S, I, H, NH, NL, VOCAB = 2, 8, 3, 32, 4, 2, 120

    key = jax.random.PRNGKey(0)
    kparam, kx = jax.random.split(key, 2)
    params = init_params(kparam, VOCAB, H, NL)

    # x: integer token ids, (B, S, I); sequence_mask: (B, S), 1=valid, 0=pad
    x_idx = jax.random.randint(kx, (B, S, I), 0, VOCAB, dtype=jnp.int32)
    lens = jnp.array([S, S - 3], dtype=jnp.int32)
    sequence_mask = (jnp.arange(S)[None, :] < lens[:, None]).astype(jnp.float32)

    out = transformer_forward(params, x_idx, sequence_mask, NH)
    out = jax.block_until_ready(out)

    ref = reference_forward(params, x_idx, sequence_mask, NH)
    assert out.shape == (B, S, H), out.shape
    max_err = float(jnp.max(jnp.abs(out - ref)))
    assert jnp.allclose(out, ref, atol=3e-2, rtol=3e-2), max_err

    print("KERNEL_OK")
</pallas_src>

<mosaic_0001>
module attributes {stable_mosaic.version = 11 : i64} {
  func.func @qkv_kernel(%arg0: i32, %arg1: memref<16x32xbf16, #tpu.memory_space<vmem>>, %arg2: memref<32x96xbf16, #tpu.memory_space<vmem>>, %arg3: memref<1x96xf32, #tpu.memory_space<vmem>>, %arg4: memref<16x96xbf16, #tpu.memory_space<vmem>>) attributes {dimension_semantics = [#tpu.dimension_semantics<parallel>], iteration_bounds = array<i64: 1>, scalar_prefetch = 0 : i64, scratch_operands = 0 : i64, tpu.core_type = #tpu.core_type<tc>, window_params = [{transform_indices = @transform_0, window_bounds = array<i64: 16, 32>}, {pipeline_mode = #tpu.pipeline_mode<synchronous>, transform_indices = @transform_1, window_bounds = array<i64: 32, 96>}, {pipeline_mode = #tpu.pipeline_mode<synchronous>, transform_indices = @transform_2, window_bounds = array<i64: 1, 96>}, {transform_indices = @transform_3, window_bounds = array<i64: 16, 96>}]} {
    %c0 = arith.constant 0 : index
    %c0_0 = arith.constant 0 : index
    %0 = vector.load %arg1[%c0, %c0_0] : memref<16x32xbf16, #tpu.memory_space<vmem>>, vector<16x32xbf16>
    %c0_1 = arith.constant 0 : index
    %c0_2 = arith.constant 0 : index
    %1 = vector.load %arg2[%c0_1, %c0_2] : memref<32x96xbf16, #tpu.memory_space<vmem>>, vector<32x96xbf16>
    %cst = arith.constant dense<0.000000e+00> : vector<16x96xf32>
    %2 = tpu.matmul %0, %1, %cst {dimension_numbers = #tpu.dot_dimension_numbers<[1], [0], [0], [1], [0, 0, 1, 1], [], []>} : vector<16x32xbf16>, vector<32x96xbf16>, vector<16x96xf32> -> vector<16x96xf32>
    %c0_3 = arith.constant 0 : index
    %c0_4 = arith.constant 0 : index
    %3 = vector.load %arg3[%c0_3, %c0_4] : memref<1x96xf32, #tpu.memory_space<vmem>>, vector<1x96xf32>
    %4 = vector.broadcast %3 : vector<1x96xf32> to vector<16x96xf32>
    %5 = arith.addf %2, %4 : vector<16x96xf32>
    %6 = arith.truncf %5 : vector<16x96xf32> to vector<16x96xbf16>
    %c0_5 = arith.constant 0 : index
    %c0_6 = arith.constant 0 : index
    %7 = vector.load %arg4[%c0_5, %c0_6] : memref<16x96xbf16, #tpu.memory_space<vmem>>, vector<16x96xbf16>
    tpu.vector_store %arg4[%c0_5, %c0_6], %6 {strides = array<i32>} : memref<16x96xbf16, #tpu.memory_space<vmem>>, vector<16x96xbf16>,
    return
  }
  func.func @transform_0(%arg0: i32) -> (i32, i32) {
    %c0_i32 = arith.constant 0 : i32
    %c0_i32_0 = arith.constant 0 : i32
    return %arg0, %c0_i32 : i32, i32
  }
  func.func @transform_1(%arg0: i32) -> (i32, i32) {
    %c0_i32 = arith.constant 0 : i32
    %c0_i32_0 = arith.constant 0 : i32
    %c0_i32_1 = arith.constant 0 : i32
    return %c0_i32, %c0_i32_0 : i32, i32
  }
  func.func @transform_2(%arg0: i32) -> (i32, i32) {
    %c0_i32 = arith.constant 0 : i32
    %c0_i32_0 = arith.constant 0 : i32
    %c0_i32_1 = arith.constant 0 : i32
    return %c0_i32, %c0_i32_0 : i32, i32
  }
  func.func @transform_3(%arg0: i32) -> (i32, i32) {
    %c0_i32 = arith.constant 0 : i32
    %c0_i32_0 = arith.constant 0 : i32
    return %arg0, %c0_i32 : i32, i32
  }
}

</mosaic_0001>

<bundles_post_ra>
// kernel: tpu_custom_call.1
= control target key start
LH: loop header
LB: loop body
LE: loop exit
PB: predicated region body
PF: predicated region fallthrough
CT: control target
= control target key end

     0   :  { %8 = vsyncpa [#allocation3], 0  ;;  %s325_s0 = inlined_call_operand.hbm [shape: bf16[16,32], index: 0, kind: input, shape index: {}]   ;;  %s326_s1 = inlined_call_operand.hbm [shape: bf16[32,96], index: 1, kind: input, shape index: {}]   ;;  %s327_s2 = inlined_call_operand.vmem [shape: f32[1,96], index: 2, kind: input, shape index: {}]   ;;  %s328_s3 = inlined_call_operand.hbm [shape: bf16[16,96], index: 3, kind: output, shape index: {}]  }
   0x1   :  { %9 = vsyncpa [#allocation6], 0 }
   0x2   :  { %10 = vsyncpa [#allocation4], 0  ;;  %s250_s12 = smov [#allocation2]   ;;  %s178_s16 = scalar_lea.hbm %s325_s0, 128 }
   0x3   :  { %s16_s13 = sshll.u32 %s250_s12, 4  ;;  %p179_p0 = scmp.ne.s32.totalorder %s325_s0, %s178_s16  ;;  %s17_s13 = int_to_ptr.vmem [resolvable:$true] %s16_s13 }
   0x4   :  { %p182_p1 = scmp.lt.u32.totalorder %s178_s16, %s325_s0 }
   0x6   :  { %p184_p2 = pnand %p182_p1, %p179_p0 }
   0x8   :  { %187 = shalt.err (!%p184_p2)
}
   0x9   :  { %s188_s21 = scalar_lea.vmem %s17_s13, 128  ;;  %p193_p4 = scmp.lt.s32.totalorder %s17_s13, %s17_s13 }
   0xa   :  { %p189_p3 = scmp.ne.s32.totalorder %s17_s13, %s188_s21  ;;  %p194_p5 = scmp.lt.s32.totalorder %s188_s21, %s188_s21 }
   0xc   :  { %p195_p6 = por %p194_p5, %p193_p4 }
   0xe   :  { %p196_p7 = pnand %p195_p6, %p189_p3 }
  0x10   :  { %199 = shalt.err (!%p196_p7)
}
  0x11   :  { %s251_s22 = smov 64   ;;  %s252_s23 = smov 4  }
  0x12   :  { %22 = dma.hbm_to_vmem [thread:$0]  %s325_s0, 128, %s17_s13, [#allocation3], %s251_s22, %s251_s22, %s252_s23  }
  0x13   :  { %s253_s26 = smov [#allocation5]   ;;  %s200_s30 = scalar_lea.hbm %s326_s1, 256 }
  0x14   :  { %s28_s27 = sshll.u32 %s253_s26, 4  ;;  %p201_p8 = scmp.ne.s32.totalorder %s326_s1, %s200_s30  ;;  %s29_s27 = int_to_ptr.vmem [resolvable:$true] %s28_s27 }
  0x15   :  { %p204_p9 = scmp.lt.u32.totalorder %s200_s30, %s326_s1 }
  0x17   :  { %p206_p10 = pnand %p204_p9, %p201_p8 }
  0x19   :  { %209 = shalt.err (!%p206_p10)
}
  0x1a   :  { %s210_s8 = scalar_lea.vmem %s29_s27, 256  ;;  %p215_p12 = scmp.lt.s32.totalorder %s29_s27, %s29_s27 }
  0x1b   :  { %p211_p11 = scmp.ne.s32.totalorder %s29_s27, %s210_s8  ;;  %p216_p13 = scmp.lt.s32.totalorder %s210_s8, %s210_s8 }
  0x1d   :  { %p217_p0 = por %p216_p13, %p215_p12 }
  0x1f   :  { %p218_p1 = pnand %p217_p0, %p211_p11 }
  0x21   :  { %221 = shalt.err (!%p218_p1)
}
  0x22   :  { %34 = dma.hbm_to_vmem [thread:$0]  %s326_s1, 256, %s29_s27, [#allocation6], %s251_s22, %s251_s22, %s252_s23  }
  0x23   :  { %244 = dma.done.wait [#allocation3], 128  }
  0x24   :  { %245 = vsyncadd [#allocation3], 4294967168 }
  0x25   :  { %246 = dma.done.wait [#allocation6], 256  }
  0x26   :  { %247 = vsyncadd [#allocation6], 4294967040  ;;  %v254_v0 = vmov 0.0   ;;  %vm255_vm0 = vmmov 0   ;;  %v175_v1 = vld [vmem:[#allocation5] sm:$0xff]   ;;  %v176_v2 = vld [vmem:[#allocation5 + $0x8] sm:$0xff]  }
  0x27   :  { %160 = vmatprep.subr.bf16.mxu0 %v254_v0  ;;  %164 = vmatprep.mubr.msk.bf16.mxu0 %vm255_vm0, %v254_v0  ;;  %v177_v3 = vld [vmem:[#allocation2] sm:$0xff]   ;;  %vm74_vm1 = vcmask 261120   ;;  %vm127_vm2 = vcmask 781312   ;;  %s256_s1 = smov [#allocation7]  }
  0x28   :  { %161 = vmatpush3.bf16.msra.mxu0 %v175_v1  ;;  %v148_v4 = vld [vmem:[%s327_s2] ss:$0 sm:$0xff]  ;;  %s135_s12 = sshll.u32 %s256_s1, 4  ;;  %s136_s12 = int_to_ptr.vmem [resolvable:$true] %s135_s12 }
  0x29   :  { %162 = vmatprep.subr.bf16.mxu0 %v254_v0  ;;  %s222_s13 = scalar_lea.vmem %s136_s12, 128  ;;  %p227_p3 = scmp.lt.s32.totalorder %s136_s12, %s136_s12 }
  0x2a   :  { %p223_p2 = scmp.ne.s32.totalorder %s136_s12, %s222_s13  ;;  %p228_p4 = scmp.lt.s32.totalorder %s222_s13, %s222_s13 }
  0x2c   :  { %163 = vmatpush3.bf16.msra.mxu0 %v176_v2  ;;  %p229_p5 = por %p228_p4, %p227_p3 }
  0x2e   :  { %p230_p6 = pnand %p229_p5, %p223_p2 }
  0x2f   :  { %165 = vmatmul.mubr.msk.bf16.vlgmr.msra.gmra.mrb[0].mxu0 %vm74_vm1, %v177_v3 }
 0x102   :  { %v112_v5 = vpop.f32.mrb[0].mxu0 }
 0x103   :  { %v113_v6 = vadd.f32 %v148_v4, %v112_v5  ;;  %v166_v7 = vpop.f32.mrb[1].mxu0 }
 0x104   :  { %v115_v8 = vpop.f32.mrb[2].mxu0 }
 0x105   :  { %v155_v9 = vpack.c.bf16 %v113_v6, %v113_v6  ;;  %v116_v10 = vadd.f32 %v148_v4, %v115_v8  ;;  %v167_v11 = vpop.f32.mrb[3].mxu0 }
 0x107   :  { %v156_v12 = vpack.c.bf16 %v116_v10, %v116_v10  ;;  %128 = vst.msk [vmem:[#allocation7] sm:$0xf] %vm127_vm2, %v155_v9 }
 0x109   :  { %129 = vst.msk [vmem:[#allocation7 + $0x4] sm:$0xf] %vm127_vm2, %v156_v12 }
 0x10a   :  { %233 = shalt.err (!%p230_p6)
}
 0x10b   :  { %s234_s15 = scalar_lea.hbm %s328_s3, 128 }
 0x10c   :  { %p235_p7 = scmp.ne.s32.totalorder %s328_s3, %s234_s15  ;;  %p238_p8 = scmp.lt.u32.totalorder %s234_s15, %s328_s3 }
 0x10e   :  { %p240_p9 = pnand %p238_p8, %p235_p7 }
 0x110   :  { %243 = shalt.err (!%p240_p9)
}
 0x111   :  { %141 = dma.vmem_to_hbm [thread:$0]  %s136_s12, 128, %s328_s3, [#allocation4], %s251_s22, %s251_s22, %s252_s23  }
 0x112   :  { %248 = dma.done.wait [#allocation4], 128  }
 0x113   :  { %249 = vsyncadd [#allocation4], 4294967168 }
 0x114   :  { %145 = vsyncpa [#allocation3], 1 }
 0x115   :  { %146 = vsyncpa [#allocation6], 1 }
 0x116   :  { %147 = vsyncpa [#allocation4], 1 }

</bundles_post_ra>
